<compile_context>
chip_gen: v5e
topology: v5e:2x2
jax: 0.10.0
libtpu: 0.0.40
codegen_flags: <defaults>
</compile_context>

<pallas_src>
import functools
import math

import jax
import jax.numpy as jnp
from jax.experimental import pallas as pl
from jax.experimental.pallas import tpu as pltpu

# Safe on every generation (v5e/v6e 128 MiB physical, v7x 64 MiB physical).
_VMEM_LIMIT_BYTES = 32 * 1024 * 1024


def _compiler_params(n_parallel_axes):
    return pltpu.CompilerParams(
        dimension_semantics=("parallel",) * n_parallel_axes,
        vmem_limit_bytes=_VMEM_LIMIT_BYTES)


def _largest_divisor_leq(n, target):
    for t in range(min(target, n), 0, -1):
        if n % t == 0:
            return t
    return n


# ---------------------------------------------------------------------------
# 1x1 conv (tiled over M = N*H*W)
# ---------------------------------------------------------------------------
def _conv1x1_kernel(x_ref, w_ref, b_ref, o_ref, *, apply_relu):
    # x_ref: (TM, Cin)  w_ref: (Cin, Cout)  b_ref: (1, Cout)  o_ref: (TM, Cout)
    x = x_ref[...]
    if apply_relu:
        x = jnp.maximum(x, 0.0)
    y = jnp.dot(x, w_ref[...], preferred_element_type=jnp.float32)
    o_ref[...] = (y + b_ref[...]).astype(o_ref.dtype)


def conv1x1(x_nhwc, w, b, *, apply_relu=False, out_dtype=None, tile_m=512):
    n, h, wd, cin = x_nhwc.shape
    cout = w.shape[-1]
    out_dtype = out_dtype or x_nhwc.dtype
    m = n * h * wd
    tm = max(8, (min(tile_m, m) // 8) * 8)
    x2d = x_nhwc.reshape(m, cin)
    # TODO(synk): when Cout < 128, fold W into the lane axis of the output
    # block to avoid masked partial stores (lane-dense output slab).
    out2d = pl.pallas_call(
        functools.partial(_conv1x1_kernel, apply_relu=apply_relu),
        out_shape=jax.ShapeDtypeStruct((m, cout), out_dtype),
        grid=(pl.cdiv(m, tm),),
        in_specs=[
            pl.BlockSpec((tm, cin), lambda i: (i, 0)),
            pl.BlockSpec((cin, cout), lambda i: (0, 0)),
            pl.BlockSpec((1, cout), lambda i: (0, 0)),
        ],
        out_specs=pl.BlockSpec((tm, cout), lambda i: (i, 0)),
        compiler_params=_compiler_params(1),
    )(x2d, w, b)
    return out2d.reshape(n, h, wd, cout)


# ---------------------------------------------------------------------------
# 3x3 conv helpers (row-tiled, halo via manual DMA from HBM)
# ---------------------------------------------------------------------------
def _dma_halo_tile(xp_hbm, xbuf, sem, th):
    """Copy rows [r*TH, r*TH + TH + 2) of the padded image into VMEM."""
    n_idx = pl.program_id(0)
    r_idx = pl.program_id(1)
    row0 = pl.multiple_of(r_idx * th, th)
    cp = pltpu.make_async_copy(xp_hbm.at[n_idx, pl.ds(row0, th + 2)], xbuf, sem)
    cp.start()
    cp.wait()


def _conv3x3_tile(xp, w_ref, b_ref, *, th, w_out):
    """3x3 conv of one (TH+2, W+2, Cin) haloed tile -> (TH, W, Cout) f32."""
    cin = xp.shape[-1]
    cout = w_ref.shape[-1]
    acc = jnp.zeros((th * w_out, cout), jnp.float32)
    for dy in range(3):                       # 3 wide-K matmuls, K = 3*Cin
        rows = xp[dy:dy + th]                 # (TH, W+2, Cin)
        patch = jnp.concatenate(
            [rows[:, 0:w_out], rows[:, 1:w_out + 1], rows[:, 2:w_out + 2]],
            axis=-1).reshape(th * w_out, 3 * cin)
        acc = acc + jnp.dot(patch, w_ref[dy],
                            preferred_element_type=jnp.float32)
    return acc.reshape(th, w_out, cout) + b_ref[...]


def _conv3x3_kernel(xp_hbm, w_ref, b_ref, o_ref, xbuf, sem, *, th, w_out,
                    apply_relu):
    _dma_halo_tile(xp_hbm, xbuf, sem, th)
    xp = xbuf[...]
    if apply_relu:
        xp = jnp.maximum(xp, 0.0)   # relu(0)=0, so pad-then-relu is exact
    y = _conv3x3_tile(xp, w_ref, b_ref, th=th, w_out=w_out)
    o_ref[0] = y.astype(o_ref.dtype)


def conv3x3(x_nhwc, w, b, *, apply_relu=False, out_dtype=None, row_tile=8):
    n, h, wd, cin = x_nhwc.shape
    cout = w.shape[-1]
    out_dtype = out_dtype or x_nhwc.dtype
    th = _largest_divisor_leq(h, row_tile)
    # TODO(synk): drop this full-tensor pad by zero-filling the halo rows /
    # columns of the VMEM tile in-kernel (3 boundary DMA cases) to save one
    # full HBM pass per 3x3 conv.
    xp = jnp.pad(x_nhwc, ((0, 0), (1, 1), (1, 1), (0, 0)))
    return pl.pallas_call(
        functools.partial(_conv3x3_kernel, th=th, w_out=wd,
                          apply_relu=apply_relu),
        out_shape=jax.ShapeDtypeStruct((n, h, wd, cout), out_dtype),
        grid=(n, h // th),
        in_specs=[
            pl.BlockSpec(memory_space=pl.ANY),        # padded image, manual DMA
            pl.BlockSpec((3, 3 * cin, cout), lambda i, r: (0, 0, 0)),
            pl.BlockSpec((1, cout), lambda i, r: (0, 0)),
        ],
        out_specs=pl.BlockSpec((1, th, wd, cout), lambda i, r: (i, r, 0, 0)),
        scratch_shapes=[
            pltpu.VMEM((th + 2, wd + 2, cin), x_nhwc.dtype),
            pltpu.SemaphoreType.DMA,
        ],
        compiler_params=_compiler_params(2),
    )(xp, w, b)


# ---------------------------------------------------------------------------
# Final 3x3 conv fused with the (optional 1x1-conv) identity path + post_gain
# ---------------------------------------------------------------------------
def _conv3x3_residual_kernel(*refs, th, w_out, post_gain, has_id_conv):
    if has_id_conv:
        (hp_hbm, w_ref, b_ref, x_ref, idw_ref, idb_ref,
         o_ref, hbuf, sem) = refs
    else:
        hp_hbm, w_ref, b_ref, x_ref, o_ref, hbuf, sem = refs
    _dma_halo_tile(hp_hbm, hbuf, sem, th)
    hp = jnp.maximum(hbuf[...], 0.0)
    res = _conv3x3_tile(hp, w_ref, b_ref, th=th, w_out=w_out)     # f32
    x = x_ref[0]                                                  # (TH, W, n_in) f32
    if has_id_conv:
        cout = w_ref.shape[-1]
        ident = jnp.dot(x.reshape(th * w_out, x.shape[-1]), idw_ref[...],
                        preferred_element_type=jnp.float32)
        ident = (ident + idb_ref[...]).reshape(th, w_out, cout)
    else:
        ident = x
    o_ref[0] = (ident + post_gain * res).astype(o_ref.dtype)


def conv3x3_residual(h_nhwc, w, b, x_nhwc, id_w, id_b, *, post_gain,
                     row_tile=8):
    n, hh, wd, nhid = h_nhwc.shape
    cout = w.shape[-1]
    n_in = x_nhwc.shape[-1]
    th = _largest_divisor_leq(hh, row_tile)
    has_id_conv = id_w is not None
    hp = jnp.pad(h_nhwc, ((0, 0), (1, 1), (1, 1), (0, 0)))

    in_specs = [
        pl.BlockSpec(memory_space=pl.ANY),            # padded h, manual DMA
        pl.BlockSpec((3, 3 * nhid, cout), lambda i, r: (0, 0, 0)),
        pl.BlockSpec((1, cout), lambda i, r: (0, 0)),
        pl.BlockSpec((1, th, wd, n_in), lambda i, r: (i, r, 0, 0)),
    ]
    inputs = [hp, w, b, x_nhwc]
    if has_id_conv:
        in_specs += [
            pl.BlockSpec((n_in, cout), lambda i, r: (0, 0)),
            pl.BlockSpec((1, cout), lambda i, r: (0, 0)),
        ]
        inputs += [id_w, id_b]

    return pl.pallas_call(
        functools.partial(_conv3x3_residual_kernel, th=th, w_out=wd,
                          post_gain=post_gain, has_id_conv=has_id_conv),
        out_shape=jax.ShapeDtypeStruct((n, hh, wd, cout), jnp.float32),
        grid=(n, hh // th),
        in_specs=in_specs,
        out_specs=pl.BlockSpec((1, th, wd, cout), lambda i, r: (i, r, 0, 0)),
        scratch_shapes=[
            pltpu.VMEM((th + 2, wd + 2, nhid), h_nhwc.dtype),
            pltpu.SemaphoreType.DMA,
        ],
        compiler_params=_compiler_params(2),
    )(*inputs)


# ---------------------------------------------------------------------------
# DecoderBlock: parameters + forward
# ---------------------------------------------------------------------------
def _uniform(key, shape, bound):
    return jax.random.uniform(key, shape, jnp.float32, -bound, bound)


def init_decoder_block_params(key, n_in, n_out):
    """PyTorch Conv2d default init: U(-1/sqrt(fan_in), 1/sqrt(fan_in))."""
    n_hid = n_out // 4
    keys = jax.random.split(key, 5)
    params = {}

    def conv1x1_p(k, cin, cout):
        bound = 1.0 / math.sqrt(cin)
        kw, kb = jax.random.split(k)
        return _uniform(kw, (cin, cout), bound), _uniform(kb, (1, cout), bound)

    def conv3x3_p(k, cin, cout):
        bound = 1.0 / math.sqrt(9 * cin)
        kw, kb = jax.random.split(k)
        # (3, 3*cin, cout): dy major; (dx, cin) flattened into the K axis.
        return (_uniform(kw, (3, 3 * cin, cout), bound),
                _uniform(kb, (1, cout), bound))

    if n_in != n_out:
        params["id_w"], params["id_b"] = conv1x1_p(keys[0], n_in, n_out)
    params["w1"], params["b1"] = conv1x1_p(keys[1], n_in, n_out // 4)
    params["w2"], params["b2"] = conv3x3_p(keys[2], n_hid, n_hid)
    params["w3"], params["b3"] = conv3x3_p(keys[3], n_hid, n_hid)
    params["w4"], params["b4"] = conv3x3_p(keys[4], n_hid, n_out)
    return params


def decoder_block_forward_nhwc(x_nhwc, params, *, n_in, n_out, n_layers,
                               compute_dtype=jnp.float32, row_tile=8,
                               tile_m=512):
    post_gain = 1.0 / (n_layers ** 2)
    cd = compute_dtype
    x_c = x_nhwc.astype(cd)
    h = conv1x1(x_c, params["w1"].astype(cd), params["b1"],
                apply_relu=True, out_dtype=cd, tile_m=tile_m)
    h = conv3x3(h, params["w2"].astype(cd), params["b2"],
                apply_relu=True, out_dtype=cd, row_tile=row_tile)
    h = conv3x3(h, params["w3"].astype(cd), params["b3"],
                apply_relu=True, out_dtype=cd, row_tile=row_tile)
    # Final res-path conv fused with the identity path and the post_gain add;
    # identity path (1x1 conv or pass-through) and residual add stay in f32.
    out = conv3x3_residual(h, params["w4"].astype(cd), params["b4"],
                           x_nhwc.astype(jnp.float32),
                           params.get("id_w"), params.get("id_b"),
                           post_gain=post_gain, row_tile=row_tile)
    return out


def decoder_block_forward(x_nchw, params, *, n_in, n_out, n_layers,
                          compute_dtype=jnp.float32):
    x = jnp.transpose(x_nchw, (0, 2, 3, 1))   # NCHW -> NHWC
    out = decoder_block_forward_nhwc(x, params, n_in=n_in, n_out=n_out,
                                     n_layers=n_layers,
                                     compute_dtype=compute_dtype)
    return jnp.transpose(out, (0, 3, 1, 2))   # NHWC -> NCHW


# ---------------------------------------------------------------------------
# Pure-JAX reference (for correctness check)
# ---------------------------------------------------------------------------
def _ref_conv(x_nhwc, w_hwio, b):
    y = jax.lax.conv_general_dilated(
        x_nhwc, w_hwio, (1, 1), "SAME",
        dimension_numbers=("NHWC", "HWIO", "NHWC"))
    return y + b.reshape(1, 1, 1, -1)


def decoder_block_reference(x_nchw, params, *, n_in, n_out, n_layers):
    post_gain = 1.0 / (n_layers ** 2)
    x = jnp.transpose(x_nchw, (0, 2, 3, 1))

    def w1x1(w):
        return w.reshape(1, 1, *w.shape)

    def w3x3(w):
        return w.reshape(3, 3, -1, w.shape[-1])

    if n_in != n_out:
        id_out = _ref_conv(x, w1x1(params["id_w"]), params["id_b"])
    else:
        id_out = x
    h = _ref_conv(jnp.maximum(x, 0.0), w1x1(params["w1"]), params["b1"])
    h = _ref_conv(jnp.maximum(h, 0.0), w3x3(params["w2"]), params["b2"])
    h = _ref_conv(jnp.maximum(h, 0.0), w3x3(params["w3"]), params["b3"])
    res = _ref_conv(jnp.maximum(h, 0.0), w3x3(params["w4"]), params["b4"])
    out = id_out + post_gain * res
    return jnp.transpose(out, (0, 3, 1, 2))


# ---------------------------------------------------------------------------
if __name__ == "__main__":
    key = jax.random.PRNGKey(0)
    k_x, k_p, k_x2, k_p2 = jax.random.split(key, 4)
    batch, spatial, n_layers = 2, 16, 2

    # Config A: n_in != n_out -> fused 1x1-conv identity path.
    n_in, n_out = 4, 8
    x = jax.random.normal(k_x, (batch, n_in, spatial, spatial), jnp.float32)
    params = init_decoder_block_params(k_p, n_in, n_out)

    out = jax.block_until_ready(
        decoder_block_forward(x, params, n_in=n_in, n_out=n_out,
                              n_layers=n_layers))
    ref = jax.block_until_ready(
        decoder_block_reference(x, params, n_in=n_in, n_out=n_out,
                                n_layers=n_layers))
    assert out.shape == (batch, n_out, spatial, spatial), out.shape
    err = float(jnp.max(jnp.abs(out - ref)))
    assert jnp.allclose(out, ref, atol=1e-4, rtol=1e-4), err

    # Config B: n_in == n_out -> identity (pass-through) id path.
    n_in2 = n_out2 = 8
    x2 = jax.random.normal(k_x2, (batch, n_in2, spatial, spatial), jnp.float32)
    params2 = init_decoder_block_params(k_p2, n_in2, n_out2)
    out2 = jax.block_until_ready(
        decoder_block_forward(x2, params2, n_in=n_in2, n_out=n_out2,
                              n_layers=n_layers))
    ref2 = decoder_block_reference(x2, params2, n_in=n_in2, n_out=n_out2,
                                   n_layers=n_layers)
    err2 = float(jnp.max(jnp.abs(out2 - ref2)))
    assert jnp.allclose(out2, ref2, atol=1e-4, rtol=1e-4), err2

    # bf16 compute path (MXU-friendly on v6e/v7x): res path in bf16, id path
    # and residual add in f32 -> loose tolerance vs the f32 reference.
    out_bf16 = jax.block_until_ready(
        decoder_block_forward(x, params, n_in=n_in, n_out=n_out,
                              n_layers=n_layers,
                              compute_dtype=jnp.bfloat16))
    err_bf16 = float(jnp.max(jnp.abs(out_bf16 - ref)))
    assert jnp.allclose(out_bf16, ref, atol=5e-2, rtol=5e-2), err_bf16

    print("KERNEL_OK")
</pallas_src>

<mosaic_0001>
module attributes {stable_mosaic.version = 11 : i64} {
  func.func @_conv1x1_kernel(%arg0: i32, %arg1: memref<512x4xf32, #tpu.memory_space<vmem>>, %arg2: memref<4x2xf32, #tpu.memory_space<vmem>>, %arg3: memref<1x2xf32, #tpu.memory_space<vmem>>, %arg4: memref<512x2xf32, #tpu.memory_space<vmem>>) attributes {dimension_semantics = [#tpu.dimension_semantics<parallel>], iteration_bounds = array<i64: 1>, scalar_prefetch = 0 : i64, scratch_operands = 0 : i64, tpu.core_type = #tpu.core_type<tc>, window_params = [{transform_indices = @transform_0, window_bounds = array<i64: 512, 4>}, {pipeline_mode = #tpu.pipeline_mode<synchronous>, transform_indices = @transform_1, window_bounds = array<i64: 4, 2>}, {pipeline_mode = #tpu.pipeline_mode<synchronous>, transform_indices = @transform_2, window_bounds = array<i64: 1, 2>}, {transform_indices = @transform_3, window_bounds = array<i64: 512, 2>}]} {
    %c0 = arith.constant 0 : index
    %c0_0 = arith.constant 0 : index
    %0 = vector.load %arg1[%c0, %c0_0] : memref<512x4xf32, #tpu.memory_space<vmem>>, vector<512x4xf32>
    %cst = arith.constant 0.000000e+00 : f32
    %1 = vector.broadcast %cst : f32 to vector<512x4xf32>
    %2 = arith.maximumf %0, %1 : vector<512x4xf32>
    %c0_1 = arith.constant 0 : index
    %c0_2 = arith.constant 0 : index
    %3 = vector.load %arg2[%c0_1, %c0_2] : memref<4x2xf32, #tpu.memory_space<vmem>>, vector<4x2xf32>
    %cst_3 = arith.constant dense<0.000000e+00> : vector<512x2xf32>
    %4 = tpu.matmul %2, %3, %cst_3 {dimension_numbers = #tpu.dot_dimension_numbers<[1], [0], [0], [1], [0, 0, 1, 1], [], []>} : vector<512x4xf32>, vector<4x2xf32>, vector<512x2xf32> -> vector<512x2xf32>
    %c0_4 = arith.constant 0 : index
    %c0_5 = arith.constant 0 : index
    %5 = vector.load %arg3[%c0_4, %c0_5] : memref<1x2xf32, #tpu.memory_space<vmem>>, vector<1x2xf32>
    %6 = vector.broadcast %5 : vector<1x2xf32> to vector<512x2xf32>
    %7 = arith.addf %4, %6 : vector<512x2xf32>
    %c0_6 = arith.constant 0 : index
    %c0_7 = arith.constant 0 : index
    %8 = vector.load %arg4[%c0_6, %c0_7] : memref<512x2xf32, #tpu.memory_space<vmem>>, vector<512x2xf32>
    tpu.vector_store %arg4[%c0_6, %c0_7], %7 {strides = array<i32>} : memref<512x2xf32, #tpu.memory_space<vmem>>, vector<512x2xf32>,
    return
  }
  func.func @transform_0(%arg0: i32) -> (i32, i32) {
    %c0_i32 = arith.constant 0 : i32
    %c0_i32_0 = arith.constant 0 : i32
    return %arg0, %c0_i32 : i32, i32
  }
  func.func @transform_1(%arg0: i32) -> (i32, i32) {
    %c0_i32 = arith.constant 0 : i32
    %c0_i32_0 = arith.constant 0 : i32
    %c0_i32_1 = arith.constant 0 : i32
    return %c0_i32, %c0_i32_0 : i32, i32
  }
  func.func @transform_2(%arg0: i32) -> (i32, i32) {
    %c0_i32 = arith.constant 0 : i32
    %c0_i32_0 = arith.constant 0 : i32
    %c0_i32_1 = arith.constant 0 : i32
    return %c0_i32, %c0_i32_0 : i32, i32
  }
  func.func @transform_3(%arg0: i32) -> (i32, i32) {
    %c0_i32 = arith.constant 0 : i32
    %c0_i32_0 = arith.constant 0 : i32
    return %arg0, %c0_i32 : i32, i32
  }
}

</mosaic_0001>

<bundles_post_ra>
// kernel: tpu_custom_call.1
= control target key start
LH: loop header
LB: loop body
LE: loop exit
PB: predicated region body
PF: predicated region fallthrough
CT: control target
= control target key end

     0   :  { %vm340_vm0 = vcmask 1043456   ;;  %vm147_vm1 = vcmask 31744   ;;  %vm553_vm2 = vcmask 15360   ;;  %s1295_s1 = inlined_call_operand.vmem [shape: f32[4,2], index: 1, kind: input, shape index: {}]   ;;  %s1296_s0 = inlined_call_operand.vmem [shape: f32[512,4], index: 0, kind: input, shape index: {}]   ;;  %s1297_s2 = inlined_call_operand.vmem [shape: f32[1,2], index: 2, kind: input, shape index: {}]   ;;  %s1298_s3 = inlined_call_operand.vmem [shape: f32[512,2], index: 3, kind: output, shape index: {}]  }
   0x1   :  { %v142_v0 = vld [vmem:[%s1295_s1] sm:$0xf]  ;;  %v47_v9 = vld [vmem:[%s1296_s0 + $0x108] sm:$0xff]  ;;  %v48_v17 = vld [vmem:[%s1296_s0 + $0x110] sm:$0xff] }
   0x2   :  { %v46_v1 = vld [vmem:[%s1296_s0 + $0x100] sm:$0xff]  ;;  %688 = vmatpush.msk.msra.mxu2 %vm340_vm0, %v142_v0  ;;  %689 = vmatpush.msk.msra.mxu3 %vm340_vm0, %v142_v0  ;;  %v63_v10 = vld [vmem:[%s1296_s0 + $0x188] sm:$0xff]  ;;  %v111_v13 = vmax.f32 %v47_v9, 0.0  ;;  %v64_v18 = vld [vmem:[%s1296_s0 + $0x190] sm:$0xff]  ;;  %v112_v21 = vmax.f32 %v48_v17, 0.0 }
   0x3   :  { %v62_v2 = vld [vmem:[%s1296_s0 + $0x180] sm:$0xff]  ;;  %v110_v3 = vmax.f32 %v46_v1, 0.0  ;;  %622 = vmatpush.msk.msra.mxu0 %vm340_vm0, %v142_v0  ;;  %687 = vmatpush.msk.msra.mxu1 %vm340_vm0, %v142_v0  ;;  %v15_v11 = vld [vmem:[%s1296_s0 + $0x8] sm:$0xff]  ;;  %v127_v14 = vmax.f32 %v63_v10, 0.0  ;;  %v16_v19 = vld [vmem:[%s1296_s0 + $0x10] sm:$0xff]  ;;  %v128_v22 = vmax.f32 %v64_v18, 0.0 }
   0x4   :  { %v126_v4 = vmax.f32 %v62_v2, 0.0  ;;  %v14_v5 = vld [vmem:[%s1296_s0] sm:$0xff]  ;;  %v31_v12 = vld [vmem:[%s1296_s0 + $0x88] sm:$0xff]  ;;  %v79_v15 = vmax.f32 %v15_v11, 0.0  ;;  %v32_v20 = vld [vmem:[%s1296_s0 + $0x90] sm:$0xff]  ;;  %v80_v23 = vmax.f32 %v16_v19, 0.0 }
   0x5   :  { %v30_v6 = vld [vmem:[%s1296_s0 + $0x80] sm:$0xff]  ;;  %v78_v7 = vmax.f32 %v14_v5, 0.0  ;;  %655 = vmatmul.msk.f32.vlgmr.msra.gmra.mxu2 %vm147_vm1, %v110_v3  ;;  %v95_v16 = vmax.f32 %v31_v12, 0.0  ;;  %v96_v24 = vmax.f32 %v32_v20, 0.0  ;;  %v49_v25 = vld [vmem:[%s1296_s0 + $0x118] sm:$0xff]  ;;  %v51_v41 = vld [vmem:[%s1296_s0 + $0x128] sm:$0xff] }
   0x6   :  { %v94_v8 = vmax.f32 %v30_v6, 0.0  ;;  %671 = vmatmul.msk.f32.vlgmr.msra.gmra.mxu3 %vm147_vm1, %v126_v4  ;;  %v65_v26 = vld [vmem:[%s1296_s0 + $0x198] sm:$0xff]  ;;  %v113_v29 = vmax.f32 %v49_v25, 0.0  ;;  %v50_v33 = vld [vmem:[%s1296_s0 + $0x120] sm:$0xff]  ;;  %v67_v42 = vld [vmem:[%s1296_s0 + $0x1a8] sm:$0xff]  ;;  %v115_v45 = vmax.f32 %v51_v41, 0.0 }
   0x7   :  { %623 = vmatmul.msk.f32.vlgmr.msra.gmra.mxu0 %vm147_vm1, %v78_v7  ;;  %v17_v27 = vld [vmem:[%s1296_s0 + $0x18] sm:$0xff]  ;;  %v129_v30 = vmax.f32 %v65_v26, 0.0  ;;  %v66_v34 = vld [vmem:[%s1296_s0 + $0x1a0] sm:$0xff]  ;;  %v114_v37 = vmax.f32 %v50_v33, 0.0  ;;  %v19_v43 = vld [vmem:[%s1296_s0 + $0x28] sm:$0xff]  ;;  %v131_v46 = vmax.f32 %v67_v42, 0.0 }
   0x8   :  { %639 = vmatmul.msk.f32.vlgmr.msra.gmra.mxu1 %vm147_vm1, %v94_v8  ;;  %v33_v28 = vld [vmem:[%s1296_s0 + $0x98] sm:$0xff]  ;;  %v81_v31 = vmax.f32 %v17_v27, 0.0  ;;  %v18_v35 = vld [vmem:[%s1296_s0 + $0x20] sm:$0xff]  ;;  %v130_v38 = vmax.f32 %v66_v34, 0.0  ;;  %v35_v44 = vld [vmem:[%s1296_s0 + $0xa8] sm:$0xff]  ;;  %v83_v47 = vmax.f32 %v19_v43, 0.0 }
   0x9   :  { %v97_v32 = vmax.f32 %v33_v28, 0.0  ;;  %v34_v36 = vld [vmem:[%s1296_s0 + $0xa0] sm:$0xff]  ;;  %v82_v39 = vmax.f32 %v18_v35, 0.0  ;;  %v99_v48 = vmax.f32 %v35_v44, 0.0  ;;  %v52_v49 = vld [vmem:[%s1296_s0 + $0x130] sm:$0xff]  ;;  %v53_v57 = vld [vmem:[%s1296_s0 + $0x138] sm:$0xff] }
   0xa   :  { %v98_v40 = vmax.f32 %v34_v36, 0.0  ;;  %v68_v50 = vld [vmem:[%s1296_s0 + $0x1b0] sm:$0xff]  ;;  %v116_v53 = vmax.f32 %v52_v49, 0.0  ;;  %v69_v58 = vld [vmem:[%s1296_s0 + $0x1b8] sm:$0xff]  ;;  %v117_v61 = vmax.f32 %v53_v57, 0.0  ;;  %v54_v1 = vld [vmem:[%s1296_s0 + $0x140] sm:$0xff] }
   0xb   :  { %v20_v51 = vld [vmem:[%s1296_s0 + $0x30] sm:$0xff]  ;;  %v132_v54 = vmax.f32 %v68_v50, 0.0  ;;  %v21_v59 = vld [vmem:[%s1296_s0 + $0x38] sm:$0xff]  ;;  %v133_v62 = vmax.f32 %v69_v58, 0.0  ;;  %v70_v2 = vld [vmem:[%s1296_s0 + $0x1c0] sm:$0xff]  ;;  %v118_v5 = vmax.f32 %v54_v1, 0.0 }
   0xc   :  { %v36_v52 = vld [vmem:[%s1296_s0 + $0xb0] sm:$0xff]  ;;  %v84_v55 = vmax.f32 %v20_v51, 0.0  ;;  %v37_v60 = vld [vmem:[%s1296_s0 + $0xb8] sm:$0xff]  ;;  %v85_v63 = vmax.f32 %v21_v59, 0.0  ;;  %v22_v3 = vld [vmem:[%s1296_s0 + $0x40] sm:$0xff]  ;;  %v134_v6 = vmax.f32 %v70_v2, 0.0 }
   0xd   :  { %656 = vmatmul.msk.f32.gmra.mxu2 %vm147_vm1, %v111_v13  ;;  %v100_v56 = vmax.f32 %v36_v52, 0.0  ;;  %v101_v0 = vmax.f32 %v37_v60, 0.0  ;;  %v38_v4 = vld [vmem:[%s1296_s0 + $0xc0] sm:$0xff]  ;;  %v86_v7 = vmax.f32 %v22_v3, 0.0  ;;  %v55_v9 = vld [vmem:[%s1296_s0 + $0x148] sm:$0xff]  ;;  %v56_v17 = vld [vmem:[%s1296_s0 + $0x150] sm:$0xff] }
   0xe   :  { %672 = vmatmul.msk.f32.gmra.mxu3 %vm147_vm1, %v127_v14  ;;  %v102_v8 = vmax.f32 %v38_v4, 0.0  ;;  %v71_v10 = vld [vmem:[%s1296_s0 + $0x1c8] sm:$0xff]  ;;  %v119_v13 = vmax.f32 %v55_v9, 0.0  ;;  %v72_v18 = vld [vmem:[%s1296_s0 + $0x1d0] sm:$0xff]  ;;  %v57_v25 = vld [vmem:[%s1296_s0 + $0x158] sm:$0xff] }
   0xf   :  { %624 = vmatmul.msk.f32.gmra.mxu0 %vm147_vm1, %v79_v15  ;;  %v23_v11 = vld [vmem:[%s1296_s0 + $0x48] sm:$0xff]  ;;  %v135_v14 = vmax.f32 %v71_v10, 0.0  ;;  %v24_v19 = vld [vmem:[%s1296_s0 + $0x50] sm:$0xff]  ;;  %v73_v26 = vld [vmem:[%s1296_s0 + $0x1d8] sm:$0xff] }
  0x10   :  { %640 = vmatmul.msk.f32.gmra.mxu1 %vm147_vm1, %v95_v16  ;;  %v39_v12 = vld [vmem:[%s1296_s0 + $0xc8] sm:$0xff]  ;;  %v87_v15 = vmax.f32 %v23_v11, 0.0  ;;  %v40_v20 = vld [vmem:[%s1296_s0 + $0xd0] sm:$0xff]  ;;  %v25_v27 = vld [vmem:[%s1296_s0 + $0x58] sm:$0xff] }
  0x11   :  { %v103_v16 = vmax.f32 %v39_v12, 0.0  ;;  %v41_v28 = vld [vmem:[%s1296_s0 + $0xd8] sm:$0xff]  ;;  %v58_v33 = vld [vmem:[%s1296_s0 + $0x160] sm:$0xff]  ;;  %v59_v41 = vld [vmem:[%s1296_s0 + $0x168] sm:$0xff] }
  0x12   :  { %v74_v34 = vld [vmem:[%s1296_s0 + $0x1e0] sm:$0xff]  ;;  %v75_v42 = vld [vmem:[%s1296_s0 + $0x1e8] sm:$0xff]  ;;  %v60_v49 = vld [vmem:[%s1296_s0 + $0x170] sm:$0xff] }
  0x13   :  { %v26_v35 = vld [vmem:[%s1296_s0 + $0x60] sm:$0xff]  ;;  %v27_v43 = vld [vmem:[%s1296_s0 + $0x68] sm:$0xff]  ;;  %v76_v50 = vld [vmem:[%s1296_s0 + $0x1f0] sm:$0xff] }
  0x14   :  { %v42_v36 = vld [vmem:[%s1296_s0 + $0xe0] sm:$0xff]  ;;  %v43_v44 = vld [vmem:[%s1296_s0 + $0xe8] sm:$0xff]  ;;  %v28_v51 = vld [vmem:[%s1296_s0 + $0x70] sm:$0xff] }
  0x15   :  { %657 = vmatmul.msk.f32.gmra.mxu2 %vm147_vm1, %v112_v21  ;;  %v120_v21 = vmax.f32 %v56_v17, 0.0  ;;  %v44_v52 = vld [vmem:[%s1296_s0 + $0xf0] sm:$0xff]  ;;  %v61_v57 = vld [vmem:[%s1296_s0 + $0x178] sm:$0xff]  ;;  %v973_v1 = vld [vmem:[%s1297_s2] ss:$0 sm:$0xff] }
  0x16   :  { %673 = vmatmul.msk.f32.gmra.mxu3 %vm147_vm1, %v128_v22  ;;  %v136_v22 = vmax.f32 %v72_v18, 0.0  ;;  %v77_v58 = vld [vmem:[%s1296_s0 + $0x1f8] sm:$0xff] }
  0x17   :  { %625 = vmatmul.msk.f32.gmra.mxu0 %vm147_vm1, %v80_v23  ;;  %v88_v23 = vmax.f32 %v24_v19, 0.0  ;;  %v29_v59 = vld [vmem:[%s1296_s0 + $0x78] sm:$0xff] }
  0x18   :  { %641 = vmatmul.msk.f32.gmra.mxu1 %vm147_vm1, %v96_v24  ;;  %v104_v24 = vmax.f32 %v40_v20, 0.0  ;;  %v45_v60 = vld [vmem:[%s1296_s0 + $0xf8] sm:$0xff] }
  0x1d   :  { %658 = vmatmul.msk.f32.gmra.mxu2 %vm147_vm1, %v113_v29  ;;  %v121_v29 = vmax.f32 %v57_v25, 0.0 }
  0x1e   :  { %674 = vmatmul.msk.f32.gmra.mxu3 %vm147_vm1, %v129_v30  ;;  %v137_v30 = vmax.f32 %v73_v26, 0.0 }
  0x1f   :  { %626 = vmatmul.msk.f32.gmra.mxu0 %vm147_vm1, %v81_v31  ;;  %v89_v31 = vmax.f32 %v25_v27, 0.0 }
  0x20   :  { %642 = vmatmul.msk.f32.gmra.mxu1 %vm147_vm1, %v97_v32  ;;  %v105_v32 = vmax.f32 %v41_v28, 0.0 }
  0x25   :  { %659 = vmatmul.msk.f32.gmra.mxu2 %vm147_vm1, %v114_v37  ;;  %v122_v37 = vmax.f32 %v58_v33, 0.0 }
  0x26   :  { %675 = vmatmul.msk.f32.gmra.mxu3 %vm147_vm1, %v130_v38  ;;  %v138_v38 = vmax.f32 %v74_v34, 0.0 }
  0x27   :  { %627 = vmatmul.msk.f32.gmra.mxu0 %vm147_vm1, %v82_v39  ;;  %v90_v39 = vmax.f32 %v26_v35, 0.0 }
  0x28   :  { %643 = vmatmul.msk.f32.gmra.mxu1 %vm147_vm1, %v98_v40  ;;  %v106_v40 = vmax.f32 %v42_v36, 0.0 }
  0x2d   :  { %660 = vmatmul.msk.f32.gmra.mxu2 %vm147_vm1, %v115_v45  ;;  %v123_v45 = vmax.f32 %v59_v41, 0.0 }
  0x2e   :  { %676 = vmatmul.msk.f32.gmra.mxu3 %vm147_vm1, %v131_v46  ;;  %v139_v46 = vmax.f32 %v75_v42, 0.0 }
  0x2f   :  { %628 = vmatmul.msk.f32.gmra.mxu0 %vm147_vm1, %v83_v47  ;;  %v91_v47 = vmax.f32 %v27_v43, 0.0 }
  0x30   :  { %644 = vmatmul.msk.f32.gmra.mxu1 %vm147_vm1, %v99_v48  ;;  %v107_v48 = vmax.f32 %v43_v44, 0.0 }
  0x35   :  { %661 = vmatmul.msk.f32.gmra.mxu2 %vm147_vm1, %v116_v53  ;;  %v124_v53 = vmax.f32 %v60_v49, 0.0 }
  0x36   :  { %677 = vmatmul.msk.f32.gmra.mxu3 %vm147_vm1, %v132_v54  ;;  %v140_v54 = vmax.f32 %v76_v50, 0.0 }
  0x37   :  { %629 = vmatmul.msk.f32.gmra.mxu0 %vm147_vm1, %v84_v55  ;;  %v92_v55 = vmax.f32 %v28_v51, 0.0 }
  0x38   :  { %645 = vmatmul.msk.f32.gmra.mxu1 %vm147_vm1, %v100_v56  ;;  %v108_v56 = vmax.f32 %v44_v52, 0.0 }
  0x3d   :  { %662 = vmatmul.msk.f32.gmra.mxu2 %vm147_vm1, %v117_v61  ;;  %v125_v61 = vmax.f32 %v61_v57, 0.0 }
  0x3e   :  { %678 = vmatmul.msk.f32.gmra.mxu3 %vm147_vm1, %v133_v62  ;;  %v141_v62 = vmax.f32 %v77_v58, 0.0 }
  0x3f   :  { %630 = vmatmul.msk.f32.gmra.mxu0 %vm147_vm1, %v85_v63  ;;  %v93_v63 = vmax.f32 %v29_v59, 0.0 }
  0x40   :  { %646 = vmatmul.msk.f32.gmra.mxu1 %vm147_vm1, %v101_v0  ;;  %v109_v0 = vmax.f32 %v45_v60, 0.0 }
  0x45   :  { %663 = vmatmul.msk.f32.gmra.mxu2 %vm147_vm1, %v118_v5 }
  0x46   :  { %679 = vmatmul.msk.f32.gmra.mxu3 %vm147_vm1, %v134_v6 }
  0x47   :  { %631 = vmatmul.msk.f32.gmra.mxu0 %vm147_vm1, %v86_v7 }
  0x48   :  { %647 = vmatmul.msk.f32.gmra.mxu1 %vm147_vm1, %v102_v8 }
  0x4d   :  { %664 = vmatmul.msk.f32.gmra.mxu2 %vm147_vm1, %v119_v13 }
  0x4e   :  { %680 = vmatmul.msk.f32.gmra.mxu3 %vm147_vm1, %v135_v14 }
  0x4f   :  { %632 = vmatmul.msk.f32.gmra.mxu0 %vm147_vm1, %v87_v15 }
  0x50   :  { %648 = vmatmul.msk.f32.gmra.mxu1 %vm147_vm1, %v103_v16 }
  0x55   :  { %665 = vmatmul.msk.f32.gmra.mxu2 %vm147_vm1, %v120_v21 }
  0x56   :  { %681 = vmatmul.msk.f32.gmra.mxu3 %vm147_vm1, %v136_v22 }
  0x57   :  { %633 = vmatmul.msk.f32.gmra.mxu0 %vm147_vm1, %v88_v23 }
  0x58   :  { %649 = vmatmul.msk.f32.gmra.mxu1 %vm147_vm1, %v104_v24 }
  0x5d   :  { %666 = vmatmul.msk.f32.gmra.mxu2 %vm147_vm1, %v121_v29 }
  0x5e   :  { %682 = vmatmul.msk.f32.gmra.mxu3 %vm147_vm1, %v137_v30 }
  0x5f   :  { %634 = vmatmul.msk.f32.gmra.mxu0 %vm147_vm1, %v89_v31 }
  0x60   :  { %650 = vmatmul.msk.f32.gmra.mxu1 %vm147_vm1, %v105_v32 }
  0x65   :  { %667 = vmatmul.msk.f32.gmra.mxu2 %vm147_vm1, %v122_v37 }
  0x66   :  { %683 = vmatmul.msk.f32.gmra.mxu3 %vm147_vm1, %v138_v38 }
  0x67   :  { %635 = vmatmul.msk.f32.gmra.mxu0 %vm147_vm1, %v90_v39 }
  0x68   :  { %651 = vmatmul.msk.f32.gmra.mxu1 %vm147_vm1, %v106_v40 }
  0x6d   :  { %668 = vmatmul.msk.f32.gmra.mxu2 %vm147_vm1, %v123_v45 }
  0x6e   :  { %684 = vmatmul.msk.f32.gmra.mxu3 %vm147_vm1, %v139_v46 }
  0x6f   :  { %636 = vmatmul.msk.f32.gmra.mxu0 %vm147_vm1, %v91_v47 }
  0x70   :  { %652 = vmatmul.msk.f32.gmra.mxu1 %vm147_vm1, %v107_v48 }
  0x75   :  { %669 = vmatmul.msk.f32.gmra.mxu2 %vm147_vm1, %v124_v53 }
  0x76   :  { %685 = vmatmul.msk.f32.gmra.mxu3 %vm147_vm1, %v140_v54 }
  0x77   :  { %637 = vmatmul.msk.f32.gmra.mxu0 %vm147_vm1, %v92_v55 }
  0x78   :  { %653 = vmatmul.msk.f32.gmra.mxu1 %vm147_vm1, %v108_v56 }
  0x7d   :  { %670 = vmatmul.msk.f32.gmra.mxu2 %vm147_vm1, %v125_v61 }
  0x7e   :  { %686 = vmatmul.msk.f32.gmra.mxu3 %vm147_vm1, %v141_v62 }
  0x7f   :  { %638 = vmatmul.msk.f32.gmra.mxu0 %vm147_vm1, %v93_v63 }
  0x80   :  { %654 = vmatmul.msk.f32.gmra.mxu1 %vm147_vm1, %v109_v0 }
  0x84   :  { %v361_v2 = vpop.f32.mrf.mxu0 }
  0x85   :  { %v409_v3 = vpop.f32.mrf.mxu1  ;;  %v362_v4 = vadd.f32 %v973_v1, %v361_v2 }
  0x86   :  { %v410_v5 = vadd.f32 %v973_v1, %v409_v3 }
  0x87   :  { %554 = vst.msk [vmem:[%s1298_s3] sm:$0xff] %vm553_vm2, %v362_v4 }
  0x88   :  { %570 = vst.msk [vmem:[%s1298_s3 + $0x80] sm:$0xff] %vm553_vm2, %v410_v5  ;;  %v457_v6 = vpop.f32.mrf.mxu2 }
  0x89   :  { %v505_v7 = vpop.f32.mrf.mxu3  ;;  %v458_v8 = vadd.f32 %v973_v1, %v457_v6 }
  0x8a   :  { %v506_v9 = vadd.f32 %v973_v1, %v505_v7 }
  0x8b   :  { %586 = vst.msk [vmem:[%s1298_s3 + $0x100] sm:$0xff] %vm553_vm2, %v458_v8 }
  0x8c   :  { %v364_v10 = vpop.f32.mrf.mxu0  ;;  %602 = vst.msk [vmem:[%s1298_s3 + $0x180] sm:$0xff] %vm553_vm2, %v506_v9 }
  0x8d   :  { %v412_v11 = vpop.f32.mrf.mxu1  ;;  %v365_v12 = vadd.f32 %v973_v1, %v364_v10 }
  0x8e   :  { %v413_v13 = vadd.f32 %v973_v1, %v412_v11 }
  0x8f   :  { %555 = vst.msk [vmem:[%s1298_s3 + $0x8] sm:$0xff] %vm553_vm2, %v365_v12 }
  0x90   :  { %571 = vst.msk [vmem:[%s1298_s3 + $0x88] sm:$0xff] %vm553_vm2, %v413_v13  ;;  %v460_v14 = vpop.f32.mrf.mxu2 }
  0x91   :  { %v508_v15 = vpop.f32.mrf.mxu3  ;;  %v461_v16 = vadd.f32 %v973_v1, %v460_v14 }
  0x92   :  { %v509_v17 = vadd.f32 %v973_v1, %v508_v15 }
  0x93   :  { %587 = vst.msk [vmem:[%s1298_s3 + $0x108] sm:$0xff] %vm553_vm2, %v461_v16 }
  0x94   :  { %v367_v18 = vpop.f32.mrf.mxu0  ;;  %603 = vst.msk [vmem:[%s1298_s3 + $0x188] sm:$0xff] %vm553_vm2, %v509_v17 }
  0x95   :  { %v415_v19 = vpop.f32.mrf.mxu1  ;;  %v368_v20 = vadd.f32 %v973_v1, %v367_v18 }
  0x96   :  { %v416_v21 = vadd.f32 %v973_v1, %v415_v19 }
  0x97   :  { %556 = vst.msk [vmem:[%s1298_s3 + $0x10] sm:$0xff] %vm553_vm2, %v368_v20 }
  0x98   :  { %572 = vst.msk [vmem:[%s1298_s3 + $0x90] sm:$0xff] %vm553_vm2, %v416_v21  ;;  %v463_v22 = vpop.f32.mrf.mxu2 }
  0x99   :  { %v511_v23 = vpop.f32.mrf.mxu3  ;;  %v464_v24 = vadd.f32 %v973_v1, %v463_v22 }
  0x9a   :  { %v512_v25 = vadd.f32 %v973_v1, %v511_v23 }
  0x9b   :  { %588 = vst.msk [vmem:[%s1298_s3 + $0x110] sm:$0xff] %vm553_vm2, %v464_v24 }
  0x9c   :  { %v370_v26 = vpop.f32.mrf.mxu0  ;;  %604 = vst.msk [vmem:[%s1298_s3 + $0x190] sm:$0xff] %vm553_vm2, %v512_v25 }
  0x9d   :  { %v418_v27 = vpop.f32.mrf.mxu1  ;;  %v371_v28 = vadd.f32 %v973_v1, %v370_v26 }
  0x9e   :  { %v419_v29 = vadd.f32 %v973_v1, %v418_v27 }
  0x9f   :  { %557 = vst.msk [vmem:[%s1298_s3 + $0x18] sm:$0xff] %vm553_vm2, %v371_v28 }
  0xa0   :  { %573 = vst.msk [vmem:[%s1298_s3 + $0x98] sm:$0xff] %vm553_vm2, %v419_v29  ;;  %v466_v30 = vpop.f32.mrf.mxu2 }
  0xa1   :  { %v514_v31 = vpop.f32.mrf.mxu3  ;;  %v467_v32 = vadd.f32 %v973_v1, %v466_v30 }
  0xa2   :  { %v515_v33 = vadd.f32 %v973_v1, %v514_v31 }
  0xa3   :  { %589 = vst.msk [vmem:[%s1298_s3 + $0x118] sm:$0xff] %vm553_vm2, %v467_v32 }
  0xa4   :  { %v373_v34 = vpop.f32.mrf.mxu0  ;;  %605 = vst.msk [vmem:[%s1298_s3 + $0x198] sm:$0xff] %vm553_vm2, %v515_v33 }
  0xa5   :  { %v421_v35 = vpop.f32.mrf.mxu1  ;;  %v374_v36 = vadd.f32 %v973_v1, %v373_v34 }
  0xa6   :  { %v422_v37 = vadd.f32 %v973_v1, %v421_v35 }
  0xa7   :  { %558 = vst.msk [vmem:[%s1298_s3 + $0x20] sm:$0xff] %vm553_vm2, %v374_v36 }
  0xa8   :  { %574 = vst.msk [vmem:[%s1298_s3 + $0xa0] sm:$0xff] %vm553_vm2, %v422_v37  ;;  %v469_v38 = vpop.f32.mrf.mxu2 }
  0xa9   :  { %v517_v39 = vpop.f32.mrf.mxu3  ;;  %v470_v40 = vadd.f32 %v973_v1, %v469_v38 }
  0xaa   :  { %v518_v41 = vadd.f32 %v973_v1, %v517_v39 }
  0xab   :  { %590 = vst.msk [vmem:[%s1298_s3 + $0x120] sm:$0xff] %vm553_vm2, %v470_v40 }
  0xac   :  { %v376_v42 = vpop.f32.mrf.mxu0  ;;  %606 = vst.msk [vmem:[%s1298_s3 + $0x1a0] sm:$0xff] %vm553_vm2, %v518_v41 }
  0xad   :  { %v424_v43 = vpop.f32.mrf.mxu1  ;;  %v377_v44 = vadd.f32 %v973_v1, %v376_v42 }
  0xae   :  { %v425_v45 = vadd.f32 %v973_v1, %v424_v43 }
  0xaf   :  { %559 = vst.msk [vmem:[%s1298_s3 + $0x28] sm:$0xff] %vm553_vm2, %v377_v44 }
  0xb0   :  { %575 = vst.msk [vmem:[%s1298_s3 + $0xa8] sm:$0xff] %vm553_vm2, %v425_v45  ;;  %v472_v46 = vpop.f32.mrf.mxu2 }
  0xb1   :  { %v520_v47 = vpop.f32.mrf.mxu3  ;;  %v473_v48 = vadd.f32 %v973_v1, %v472_v46 }
  0xb2   :  { %v521_v49 = vadd.f32 %v973_v1, %v520_v47 }
  0xb3   :  { %591 = vst.msk [vmem:[%s1298_s3 + $0x128] sm:$0xff] %vm553_vm2, %v473_v48 }
  0xb4   :  { %v379_v50 = vpop.f32.mrf.mxu0  ;;  %607 = vst.msk [vmem:[%s1298_s3 + $0x1a8] sm:$0xff] %vm553_vm2, %v521_v49 }
  0xb5   :  { %v427_v51 = vpop.f32.mrf.mxu1  ;;  %v380_v52 = vadd.f32 %v973_v1, %v379_v50 }
  0xb6   :  { %v428_v53 = vadd.f32 %v973_v1, %v427_v51 }
  0xb7   :  { %560 = vst.msk [vmem:[%s1298_s3 + $0x30] sm:$0xff] %vm553_vm2, %v380_v52 }
  0xb8   :  { %576 = vst.msk [vmem:[%s1298_s3 + $0xb0] sm:$0xff] %vm553_vm2, %v428_v53  ;;  %v475_v54 = vpop.f32.mrf.mxu2 }
  0xb9   :  { %v523_v55 = vpop.f32.mrf.mxu3  ;;  %v476_v56 = vadd.f32 %v973_v1, %v475_v54 }
  0xba   :  { %v524_v57 = vadd.f32 %v973_v1, %v523_v55 }
  0xbb   :  { %592 = vst.msk [vmem:[%s1298_s3 + $0x130] sm:$0xff] %vm553_vm2, %v476_v56 }
  0xbc   :  { %v382_v58 = vpop.f32.mrf.mxu0  ;;  %608 = vst.msk [vmem:[%s1298_s3 + $0x1b0] sm:$0xff] %vm553_vm2, %v524_v57 }
  0xbd   :  { %v430_v59 = vpop.f32.mrf.mxu1  ;;  %v383_v60 = vadd.f32 %v973_v1, %v382_v58 }
  0xbe   :  { %v431_v61 = vadd.f32 %v973_v1, %v430_v59 }
  0xbf   :  { %561 = vst.msk [vmem:[%s1298_s3 + $0x38] sm:$0xff] %vm553_vm2, %v383_v60 }
  0xc0   :  { %577 = vst.msk [vmem:[%s1298_s3 + $0xb8] sm:$0xff] %vm553_vm2, %v431_v61  ;;  %v478_v62 = vpop.f32.mrf.mxu2 }
  0xc1   :  { %v526_v63 = vpop.f32.mrf.mxu3  ;;  %v479_v0 = vadd.f32 %v973_v1, %v478_v62 }
  0xc2   :  { %v527_v2 = vadd.f32 %v973_v1, %v526_v63 }
  0xc3   :  { %593 = vst.msk [vmem:[%s1298_s3 + $0x138] sm:$0xff] %vm553_vm2, %v479_v0 }
  0xc4   :  { %v385_v3 = vpop.f32.mrf.mxu0  ;;  %609 = vst.msk [vmem:[%s1298_s3 + $0x1b8] sm:$0xff] %vm553_vm2, %v527_v2 }
  0xc5   :  { %v433_v4 = vpop.f32.mrf.mxu1  ;;  %v386_v5 = vadd.f32 %v973_v1, %v385_v3 }
  0xc6   :  { %v434_v6 = vadd.f32 %v973_v1, %v433_v4 }
  0xc7   :  { %562 = vst.msk [vmem:[%s1298_s3 + $0x40] sm:$0xff] %vm553_vm2, %v386_v5 }
  0xc8   :  { %578 = vst.msk [vmem:[%s1298_s3 + $0xc0] sm:$0xff] %vm553_vm2, %v434_v6  ;;  %v481_v7 = vpop.f32.mrf.mxu2 }
  0xc9   :  { %v529_v8 = vpop.f32.mrf.mxu3  ;;  %v482_v9 = vadd.f32 %v973_v1, %v481_v7 }
  0xca   :  { %v530_v10 = vadd.f32 %v973_v1, %v529_v8 }
  0xcb   :  { %594 = vst.msk [vmem:[%s1298_s3 + $0x140] sm:$0xff] %vm553_vm2, %v482_v9 }
  0xcc   :  { %v388_v11 = vpop.f32.mrf.mxu0  ;;  %610 = vst.msk [vmem:[%s1298_s3 + $0x1c0] sm:$0xff] %vm553_vm2, %v530_v10 }
  0xcd   :  { %v436_v12 = vpop.f32.mrf.mxu1  ;;  %v389_v13 = vadd.f32 %v973_v1, %v388_v11 }
  0xce   :  { %v437_v14 = vadd.f32 %v973_v1, %v436_v12 }
  0xcf   :  { %563 = vst.msk [vmem:[%s1298_s3 + $0x48] sm:$0xff] %vm553_vm2, %v389_v13 }
  0xd0   :  { %579 = vst.msk [vmem:[%s1298_s3 + $0xc8] sm:$0xff] %vm553_vm2, %v437_v14  ;;  %v484_v15 = vpop.f32.mrf.mxu2 }
  0xd1   :  { %v532_v16 = vpop.f32.mrf.mxu3  ;;  %v485_v17 = vadd.f32 %v973_v1, %v484_v15 }
  0xd2   :  { %v533_v18 = vadd.f32 %v973_v1, %v532_v16 }
  0xd3   :  { %595 = vst.msk [vmem:[%s1298_s3 + $0x148] sm:$0xff] %vm553_vm2, %v485_v17 }
  0xd4   :  { %v391_v19 = vpop.f32.mrf.mxu0  ;;  %611 = vst.msk [vmem:[%s1298_s3 + $0x1c8] sm:$0xff] %vm553_vm2, %v533_v18 }
  0xd5   :  { %v439_v20 = vpop.f32.mrf.mxu1  ;;  %v392_v21 = vadd.f32 %v973_v1, %v391_v19 }
  0xd6   :  { %v440_v22 = vadd.f32 %v973_v1, %v439_v20 }
  0xd7   :  { %564 = vst.msk [vmem:[%s1298_s3 + $0x50] sm:$0xff] %vm553_vm2, %v392_v21 }
  0xd8   :  { %580 = vst.msk [vmem:[%s1298_s3 + $0xd0] sm:$0xff] %vm553_vm2, %v440_v22  ;;  %v487_v23 = vpop.f32.mrf.mxu2 }
  0xd9   :  { %v535_v24 = vpop.f32.mrf.mxu3  ;;  %v488_v25 = vadd.f32 %v973_v1, %v487_v23 }
  0xda   :  { %v536_v26 = vadd.f32 %v973_v1, %v535_v24 }
  0xdb   :  { %596 = vst.msk [vmem:[%s1298_s3 + $0x150] sm:$0xff] %vm553_vm2, %v488_v25 }
  0xdc   :  { %v394_v27 = vpop.f32.mrf.mxu0  ;;  %612 = vst.msk [vmem:[%s1298_s3 + $0x1d0] sm:$0xff] %vm553_vm2, %v536_v26 }
  0xdd   :  { %v442_v28 = vpop.f32.mrf.mxu1  ;;  %v395_v29 = vadd.f32 %v973_v1, %v394_v27 }
  0xde   :  { %v443_v30 = vadd.f32 %v973_v1, %v442_v28 }
  0xdf   :  { %565 = vst.msk [vmem:[%s1298_s3 + $0x58] sm:$0xff] %vm553_vm2, %v395_v29 }
  0xe0   :  { %581 = vst.msk [vmem:[%s1298_s3 + $0xd8] sm:$0xff] %vm553_vm2, %v443_v30  ;;  %v490_v31 = vpop.f32.mrf.mxu2 }
  0xe1   :  { %v538_v32 = vpop.f32.mrf.mxu3  ;;  %v491_v33 = vadd.f32 %v973_v1, %v490_v31 }
  0xe2   :  { %v539_v34 = vadd.f32 %v973_v1, %v538_v32 }
  0xe3   :  { %597 = vst.msk [vmem:[%s1298_s3 + $0x158] sm:$0xff] %vm553_vm2, %v491_v33 }
  0xe4   :  { %v397_v35 = vpop.f32.mrf.mxu0  ;;  %613 = vst.msk [vmem:[%s1298_s3 + $0x1d8] sm:$0xff] %vm553_vm2, %v539_v34 }
  0xe5   :  { %v445_v36 = vpop.f32.mrf.mxu1  ;;  %v398_v37 = vadd.f32 %v973_v1, %v397_v35 }
  0xe6   :  { %v446_v38 = vadd.f32 %v973_v1, %v445_v36 }
  0xe7   :  { %566 = vst.msk [vmem:[%s1298_s3 + $0x60] sm:$0xff] %vm553_vm2, %v398_v37 }
  0xe8   :  { %582 = vst.msk [vmem:[%s1298_s3 + $0xe0] sm:$0xff] %vm553_vm2, %v446_v38  ;;  %v493_v39 = vpop.f32.mrf.mxu2 }
  0xe9   :  { %v541_v40 = vpop.f32.mrf.mxu3  ;;  %v494_v41 = vadd.f32 %v973_v1, %v493_v39 }
  0xea   :  { %v542_v42 = vadd.f32 %v973_v1, %v541_v40 }
  0xeb   :  { %598 = vst.msk [vmem:[%s1298_s3 + $0x160] sm:$0xff] %vm553_vm2, %v494_v41 }
  0xec   :  { %v400_v43 = vpop.f32.mrf.mxu0  ;;  %614 = vst.msk [vmem:[%s1298_s3 + $0x1e0] sm:$0xff] %vm553_vm2, %v542_v42 }
  0xed   :  { %v448_v44 = vpop.f32.mrf.mxu1  ;;  %v401_v45 = vadd.f32 %v973_v1, %v400_v43 }
  0xee   :  { %v449_v46 = vadd.f32 %v973_v1, %v448_v44 }
  0xef   :  { %567 = vst.msk [vmem:[%s1298_s3 + $0x68] sm:$0xff] %vm553_vm2, %v401_v45 }
  0xf0   :  { %583 = vst.msk [vmem:[%s1298_s3 + $0xe8] sm:$0xff] %vm553_vm2, %v449_v46  ;;  %v496_v47 = vpop.f32.mrf.mxu2 }
  0xf1   :  { %v544_v48 = vpop.f32.mrf.mxu3  ;;  %v497_v49 = vadd.f32 %v973_v1, %v496_v47 }
  0xf2   :  { %v545_v50 = vadd.f32 %v973_v1, %v544_v48 }
  0xf3   :  { %599 = vst.msk [vmem:[%s1298_s3 + $0x168] sm:$0xff] %vm553_vm2, %v497_v49 }
  0xf4   :  { %v403_v51 = vpop.f32.mrf.mxu0  ;;  %615 = vst.msk [vmem:[%s1298_s3 + $0x1e8] sm:$0xff] %vm553_vm2, %v545_v50 }
  0xf5   :  { %v451_v52 = vpop.f32.mrf.mxu1  ;;  %v404_v53 = vadd.f32 %v973_v1, %v403_v51 }
  0xf6   :  { %v452_v54 = vadd.f32 %v973_v1, %v451_v52 }
  0xf7   :  { %568 = vst.msk [vmem:[%s1298_s3 + $0x70] sm:$0xff] %vm553_vm2, %v404_v53 }
  0xf8   :  { %584 = vst.msk [vmem:[%s1298_s3 + $0xf0] sm:$0xff] %vm553_vm2, %v452_v54  ;;  %v499_v55 = vpop.f32.mrf.mxu2 }
  0xf9   :  { %v547_v56 = vpop.f32.mrf.mxu3  ;;  %v500_v57 = vadd.f32 %v973_v1, %v499_v55 }
  0xfa   :  { %v548_v58 = vadd.f32 %v973_v1, %v547_v56 }
  0xfb   :  { %600 = vst.msk [vmem:[%s1298_s3 + $0x170] sm:$0xff] %vm553_vm2, %v500_v57 }
  0xfc   :  { %v406_v59 = vpop.f32.mrf.mxu0  ;;  %616 = vst.msk [vmem:[%s1298_s3 + $0x1f0] sm:$0xff] %vm553_vm2, %v548_v58 }
  0xfd   :  { %v454_v60 = vpop.f32.mrf.mxu1  ;;  %v407_v61 = vadd.f32 %v973_v1, %v406_v59 }
  0xfe   :  { %v455_v62 = vadd.f32 %v973_v1, %v454_v60 }
  0xff   :  { %569 = vst.msk [vmem:[%s1298_s3 + $0x78] sm:$0xff] %vm553_vm2, %v407_v61 }
 0x100   :  { %585 = vst.msk [vmem:[%s1298_s3 + $0xf8] sm:$0xff] %vm553_vm2, %v455_v62  ;;  %v502_v63 = vpop.f32.mrf.mxu2 }
 0x101   :  { %v550_v0 = vpop.f32.mrf.mxu3  ;;  %v503_v2 = vadd.f32 %v973_v1, %v502_v63 }
 0x102   :  { %v551_v3 = vadd.f32 %v973_v1, %v550_v0 }
 0x103   :  { %601 = vst.msk [vmem:[%s1298_s3 + $0x178] sm:$0xff] %vm553_vm2, %v503_v2 }
 0x104   :  { %617 = vst.msk [vmem:[%s1298_s3 + $0x1f8] sm:$0xff] %vm553_vm2, %v551_v3 }

</bundles_post_ra>
